<compile_context>
chip_gen: v6e
topology: v6e:2x2x1
jax: 0.10.0
libtpu: 0.0.40
codegen_flags: <defaults>
</compile_context>

<pallas_src>
import functools

import jax
import jax.numpy as jnp
import numpy as np
from jax.experimental import pallas as pl
from jax.experimental.pallas import tpu as pltpu


def dense_conv_kernel(alpha_ref, w_ref, x_ref, o_ref, *, H, W, K):
    # alpha_ref: (1,) f32 SMEM            -- PReLU slope (num_parameters=1, shared)
    # w_ref:     (C2, K*K*C1) f32 VMEM    -- pre-packed conv weights (tap-major, then c1)
    # x_ref:     (N, C1, H*W) f32 VMEM    -- whole batch, spatial flattened on lanes
    # o_ref:     (N, C1+C2, H*W) VMEM     -- concat(x, prelu(conv(x))) on channel axis
    N, C1, HW = x_ref.shape
    pad = (K - 1) // 2

    # ---- Boundary masks, hoisted out of the tap loop (computed once, reused
    # across all taps and all images). lane is the within-image flat index.
    lane = jax.lax.broadcasted_iota(jnp.int32, (C1, HW), 1)
    col = (lane & (W - 1)) if (W & (W - 1)) == 0 else (lane % W)
    row_cond = {}
    col_cond = {}
    for dh in range(-pad, pad + 1):
        if dh < 0:
            row_cond[dh] = lane >= (-dh) * W            # source row >= 0
        elif dh > 0:
            row_cond[dh] = lane < (H - dh) * W          # source row <  H
    for dw in range(-pad, pad + 1):
        if dw < 0:
            col_cond[dw] = col >= -dw                   # source col >= 0
        elif dw > 0:
            col_cond[dw] = col < (W - dw)               # source col <  W

    # ---- im2col entirely in registers: per image, each tap (dh,dw) is a
    # cyclic lane-roll (XLU) of the resident (C1,HW) tile with border positions
    # zeroed (supplies the conv's zero padding and masks roll wrap-around).
    xs = []
    patches = []
    for n in range(N):                                  # N=2, static unroll
        x = x_ref[n]                                    # (C1, HW), lane-dense
        xs.append(x)
        slabs = []
        for ki in range(K):
            for kj in range(K):
                dh, dw = ki - pad, kj - pad
                d = dh * W + dw
                shifted = x if d == 0 else pltpu.roll(x, shift=(-d) % HW, axis=1)
                cond = None
                if dh != 0:
                    cond = row_cond[dh]
                if dw != 0:
                    cond = col_cond[dw] if cond is None else cond & col_cond[dw]
                if cond is not None:
                    shifted = jnp.where(cond, shifted, 0.0)
                slabs.append(shifted)
        patches.append(jnp.concatenate(slabs, axis=0))  # (K*K*C1, HW) in registers

    # Batch-fused patch operand: (K*K*C1, N*HW); lane concat of 256-wide pieces.
    patch_all = patches[0] if N == 1 else jnp.concatenate(patches, axis=1)

    # ONE MXU matmul for the whole batch: (C2, 36) @ (36, N*HW).
    conv_all = jnp.dot(w_ref[...], patch_all,
                       preferred_element_type=jnp.float32)   # (C2, N*HW)

    # norm = Identity (nrm=None default); act = PReLU with one shared slope.
    a = alpha_ref[0]
    act_all = jnp.where(conv_all > 0, conv_all, a * conv_all)

    # out = cat((x, act), channel) -- one fused, lane-dense store per image.
    for n in range(N):
        act_n = act_all[:, n * HW:(n + 1) * HW]              # aligned lane slice
        o_ref[n] = jnp.concatenate([xs[n], act_n], axis=0).astype(o_ref.dtype)


def dense_conv0(x_nchw, w_oihw, alpha):
    """x_nchw: (N, C1, H, W); w_oihw: (C2, C1, K, K) (PyTorch layout); alpha: (1,)."""
    N, C1, H, W = x_nchw.shape
    C2, _, K, _ = w_oihw.shape
    HW = H * W
    Ctot = C1 + C2

    # Free (bitcast) reshape: keep NCHW order, put H*W on the lane axis.
    x_flat = x_nchw.reshape(N, C1, HW)
    # Pre-pack weights to (C2, K*K*C1) matching the im2col row order
    # (tap-major, then input channel). Tiny one-time transform (288 elements).
    w_packed = jnp.transpose(w_oihw, (0, 2, 3, 1)).reshape(C2, K * K * C1)

    out_flat = pl.pallas_call(
        functools.partial(dense_conv_kernel, H=H, W=W, K=K),
        out_shape=jax.ShapeDtypeStruct((N, Ctot, HW), x_nchw.dtype),
        grid_spec=pltpu.PrefetchScalarGridSpec(
            num_scalar_prefetch=0,
            grid=(1,),                                    # single step: no per-step overhead
            in_specs=[
                pl.BlockSpec(memory_space=pltpu.MemorySpace.SMEM),      # alpha (scalar)
                pl.BlockSpec((C2, K * K * C1), lambda i: (0, 0)),       # packed weights
                pl.BlockSpec((N, C1, HW), lambda i: (0, 0, 0)),         # whole batch input
            ],
            out_specs=pl.BlockSpec((N, Ctot, HW), lambda i: (0, 0, 0)), # whole batch output
        ),
        compiler_params=pltpu.CompilerParams(
            dimension_semantics=("arbitrary",)),
    )(alpha, w_packed, x_flat)

    # Free reshape back to NCHW-compatible (N, C1+C2, H, W); no transpose needed.
    return out_flat.reshape(N, Ctot, H, W)


def _reference(x_nchw, w_oihw, alpha):
    conv = jax.lax.conv_general_dilated(
        x_nchw, w_oihw, window_strides=(1, 1), padding="SAME",
        dimension_numbers=("NCHW", "OIHW", "NCHW"))
    act = jnp.where(conv > 0, conv, alpha[0] * conv)
    return jnp.concatenate([x_nchw, act], axis=1)


if __name__ == "__main__":
    # ch = (C1, C2) = (4, 8), k = 3, act='prelu' (slope 0.25), nrm=None, bias=False
    N, C1, C2, H, W, K = 2, 4, 8, 16, 16, 3

    key = jax.random.PRNGKey(0)
    kx, kw = jax.random.split(key)
    x = jax.random.normal(kx, (N, C1, H, W), dtype=jnp.float32)
    # Deterministic synthetic conv weights in PyTorch OIHW layout (no checkpoint load).
    w = jax.random.normal(kw, (C2, C1, K, K), dtype=jnp.float32) * 0.1
    alpha = jnp.array([0.25], dtype=jnp.float32)   # nn.PReLU() default init

    out = jax.block_until_ready(dense_conv0(x, w, alpha))
    ref = jax.block_until_ready(_reference(x, w, alpha))

    assert out.shape == (N, C1 + C2, H, W), out.shape
    np.testing.assert_allclose(np.asarray(out), np.asarray(ref), rtol=1e-4, atol=1e-5)
    print("KERNEL_OK")
</pallas_src>

<mosaic_0001>
module attributes {stable_mosaic.version = 11 : i64} {
  func.func @dense_conv_kernel(%arg0: i32, %arg1: memref<1xf32, #tpu.memory_space<smem>>, %arg2: memref<8x36xf32, #tpu.memory_space<vmem>>, %arg3: memref<2x4x256xf32, #tpu.memory_space<vmem>>, %arg4: memref<2x12x256xf32, #tpu.memory_space<vmem>>) attributes {dimension_semantics = [#tpu.dimension_semantics<arbitrary>], iteration_bounds = array<i64: 1>, scalar_prefetch = 0 : i64, scratch_operands = 0 : i64, tpu.core_type = #tpu.core_type<tc>, window_params = [{transform_indices = @transform_0, window_bounds = array<i64: 1>}, {pipeline_mode = #tpu.pipeline_mode<synchronous>, transform_indices = @transform_1, window_bounds = array<i64: 8, 36>}, {pipeline_mode = #tpu.pipeline_mode<synchronous>, transform_indices = @transform_2, window_bounds = array<i64: 2, 4, 256>}, {pipeline_mode = #tpu.pipeline_mode<synchronous>, transform_indices = @transform_3, window_bounds = array<i64: 2, 12, 256>}]} {
    %0 = tpu.iota {dimensions = array<i32: 1>} : vector<4x256xi32>
    %c15_i32 = arith.constant 15 : i32
    %1 = vector.broadcast %c15_i32 : i32 to vector<4x256xi32>
    %2 = arith.andi %0, %1 : vector<4x256xi32>
    %c16_i32 = arith.constant 16 : i32
    %3 = vector.broadcast %c16_i32 : i32 to vector<4x256xi32>
    %4 = arith.cmpi sge, %0, %3 : vector<4x256xi32>
    %c240_i32 = arith.constant 240 : i32
    %5 = vector.broadcast %c240_i32 : i32 to vector<4x256xi32>
    %6 = arith.cmpi slt, %0, %5 : vector<4x256xi32>
    %c1_i32 = arith.constant 1 : i32
    %7 = vector.broadcast %c1_i32 : i32 to vector<4x256xi32>
    %8 = arith.cmpi sge, %2, %7 : vector<4x256xi32>
    %c15_i32_0 = arith.constant 15 : i32
    %9 = vector.broadcast %c15_i32_0 : i32 to vector<4x256xi32>
    %10 = arith.cmpi slt, %2, %9 : vector<4x256xi32>
    %c0 = arith.constant 0 : index
    %c0_1 = arith.constant 0 : index
    %c0_2 = arith.constant 0 : index
    %11 = vector.load %arg3[%c0, %c0_1, %c0_2] : memref<2x4x256xf32, #tpu.memory_space<vmem>>, vector<1x4x256xf32>
    %12 = vector.shape_cast %11 : vector<1x4x256xf32> to vector<4x256xf32>
    %c17_i32 = arith.constant 17 : i32
    %13 = tpu.dynamic_rotate %12 by %c17_i32 dim 1 : vector<4x256xf32>, i32 -> vector<4x256xf32>
    %14 = arith.andi %4, %8 : vector<4x256xi1>
    %cst = arith.constant 0.000000e+00 : f32
    %15 = vector.broadcast %cst : f32 to vector<4x256xf32>
    %16 = arith.select %14, %13, %15 : vector<4x256xi1>, vector<4x256xf32>
    %c16_i32_3 = arith.constant 16 : i32
    %17 = tpu.dynamic_rotate %12 by %c16_i32_3 dim 1 : vector<4x256xf32>, i32 -> vector<4x256xf32>
    %cst_4 = arith.constant 0.000000e+00 : f32
    %18 = vector.broadcast %cst_4 : f32 to vector<4x256xf32>
    %19 = arith.select %4, %17, %18 : vector<4x256xi1>, vector<4x256xf32>
    %c15_i32_5 = arith.constant 15 : i32
    %20 = tpu.dynamic_rotate %12 by %c15_i32_5 dim 1 : vector<4x256xf32>, i32 -> vector<4x256xf32>
    %21 = arith.andi %4, %10 : vector<4x256xi1>
    %cst_6 = arith.constant 0.000000e+00 : f32
    %22 = vector.broadcast %cst_6 : f32 to vector<4x256xf32>
    %23 = arith.select %21, %20, %22 : vector<4x256xi1>, vector<4x256xf32>
    %c1_i32_7 = arith.constant 1 : i32
    %24 = tpu.dynamic_rotate %12 by %c1_i32_7 dim 1 : vector<4x256xf32>, i32 -> vector<4x256xf32>
    %cst_8 = arith.constant 0.000000e+00 : f32
    %25 = vector.broadcast %cst_8 : f32 to vector<4x256xf32>
    %26 = arith.select %8, %24, %25 : vector<4x256xi1>, vector<4x256xf32>
    %c255_i32 = arith.constant 255 : i32
    %27 = tpu.dynamic_rotate %12 by %c255_i32 dim 1 : vector<4x256xf32>, i32 -> vector<4x256xf32>
    %cst_9 = arith.constant 0.000000e+00 : f32
    %28 = vector.broadcast %cst_9 : f32 to vector<4x256xf32>
    %29 = arith.select %10, %27, %28 : vector<4x256xi1>, vector<4x256xf32>
    %c241_i32 = arith.constant 241 : i32
    %30 = tpu.dynamic_rotate %12 by %c241_i32 dim 1 : vector<4x256xf32>, i32 -> vector<4x256xf32>
    %31 = arith.andi %6, %8 : vector<4x256xi1>
    %cst_10 = arith.constant 0.000000e+00 : f32
    %32 = vector.broadcast %cst_10 : f32 to vector<4x256xf32>
    %33 = arith.select %31, %30, %32 : vector<4x256xi1>, vector<4x256xf32>
    %c240_i32_11 = arith.constant 240 : i32
    %34 = tpu.dynamic_rotate %12 by %c240_i32_11 dim 1 : vector<4x256xf32>, i32 -> vector<4x256xf32>
    %cst_12 = arith.constant 0.000000e+00 : f32
    %35 = vector.broadcast %cst_12 : f32 to vector<4x256xf32>
    %36 = arith.select %6, %34, %35 : vector<4x256xi1>, vector<4x256xf32>
    %c239_i32 = arith.constant 239 : i32
    %37 = tpu.dynamic_rotate %12 by %c239_i32 dim 1 : vector<4x256xf32>, i32 -> vector<4x256xf32>
    %38 = arith.andi %6, %10 : vector<4x256xi1>
    %cst_13 = arith.constant 0.000000e+00 : f32
    %39 = vector.broadcast %cst_13 : f32 to vector<4x256xf32>
    %40 = arith.select %38, %37, %39 : vector<4x256xi1>, vector<4x256xf32>
    %41 = tpu.concatenate %16, %19, %23, %26, %12, %29, %33, %36, %40 in 0 : vector<4x256xf32>, vector<4x256xf32>, vector<4x256xf32>, vector<4x256xf32>, vector<4x256xf32>, vector<4x256xf32>, vector<4x256xf32>, vector<4x256xf32>, vector<4x256xf32> -> vector<36x256xf32>
    %c1 = arith.constant 1 : index
    %c0_14 = arith.constant 0 : index
    %c0_15 = arith.constant 0 : index
    %42 = vector.load %arg3[%c1, %c0_14, %c0_15] : memref<2x4x256xf32, #tpu.memory_space<vmem>>, vector<1x4x256xf32>
    %43 = vector.shape_cast %42 : vector<1x4x256xf32> to vector<4x256xf32>
    %c17_i32_16 = arith.constant 17 : i32
    %44 = tpu.dynamic_rotate %43 by %c17_i32_16 dim 1 : vector<4x256xf32>, i32 -> vector<4x256xf32>
    %45 = arith.andi %4, %8 : vector<4x256xi1>
    %cst_17 = arith.constant 0.000000e+00 : f32
    %46 = vector.broadcast %cst_17 : f32 to vector<4x256xf32>
    %47 = arith.select %45, %44, %46 : vector<4x256xi1>, vector<4x256xf32>
    %c16_i32_18 = arith.constant 16 : i32
    %48 = tpu.dynamic_rotate %43 by %c16_i32_18 dim 1 : vector<4x256xf32>, i32 -> vector<4x256xf32>
    %cst_19 = arith.constant 0.000000e+00 : f32
    %49 = vector.broadcast %cst_19 : f32 to vector<4x256xf32>
    %50 = arith.select %4, %48, %49 : vector<4x256xi1>, vector<4x256xf32>
    %c15_i32_20 = arith.constant 15 : i32
    %51 = tpu.dynamic_rotate %43 by %c15_i32_20 dim 1 : vector<4x256xf32>, i32 -> vector<4x256xf32>
    %52 = arith.andi %4, %10 : vector<4x256xi1>
    %cst_21 = arith.constant 0.000000e+00 : f32
    %53 = vector.broadcast %cst_21 : f32 to vector<4x256xf32>
    %54 = arith.select %52, %51, %53 : vector<4x256xi1>, vector<4x256xf32>
    %c1_i32_22 = arith.constant 1 : i32
    %55 = tpu.dynamic_rotate %43 by %c1_i32_22 dim 1 : vector<4x256xf32>, i32 -> vector<4x256xf32>
    %cst_23 = arith.constant 0.000000e+00 : f32
    %56 = vector.broadcast %cst_23 : f32 to vector<4x256xf32>
    %57 = arith.select %8, %55, %56 : vector<4x256xi1>, vector<4x256xf32>
    %c255_i32_24 = arith.constant 255 : i32
    %58 = tpu.dynamic_rotate %43 by %c255_i32_24 dim 1 : vector<4x256xf32>, i32 -> vector<4x256xf32>
    %cst_25 = arith.constant 0.000000e+00 : f32
    %59 = vector.broadcast %cst_25 : f32 to vector<4x256xf32>
    %60 = arith.select %10, %58, %59 : vector<4x256xi1>, vector<4x256xf32>
    %c241_i32_26 = arith.constant 241 : i32
    %61 = tpu.dynamic_rotate %43 by %c241_i32_26 dim 1 : vector<4x256xf32>, i32 -> vector<4x256xf32>
    %62 = arith.andi %6, %8 : vector<4x256xi1>
    %cst_27 = arith.constant 0.000000e+00 : f32
    %63 = vector.broadcast %cst_27 : f32 to vector<4x256xf32>
    %64 = arith.select %62, %61, %63 : vector<4x256xi1>, vector<4x256xf32>
    %c240_i32_28 = arith.constant 240 : i32
    %65 = tpu.dynamic_rotate %43 by %c240_i32_28 dim 1 : vector<4x256xf32>, i32 -> vector<4x256xf32>
    %cst_29 = arith.constant 0.000000e+00 : f32
    %66 = vector.broadcast %cst_29 : f32 to vector<4x256xf32>
    %67 = arith.select %6, %65, %66 : vector<4x256xi1>, vector<4x256xf32>
    %c239_i32_30 = arith.constant 239 : i32
    %68 = tpu.dynamic_rotate %43 by %c239_i32_30 dim 1 : vector<4x256xf32>, i32 -> vector<4x256xf32>
    %69 = arith.andi %6, %10 : vector<4x256xi1>
    %cst_31 = arith.constant 0.000000e+00 : f32
    %70 = vector.broadcast %cst_31 : f32 to vector<4x256xf32>
    %71 = arith.select %69, %68, %70 : vector<4x256xi1>, vector<4x256xf32>
    %72 = tpu.concatenate %47, %50, %54, %57, %43, %60, %64, %67, %71 in 0 : vector<4x256xf32>, vector<4x256xf32>, vector<4x256xf32>, vector<4x256xf32>, vector<4x256xf32>, vector<4x256xf32>, vector<4x256xf32>, vector<4x256xf32>, vector<4x256xf32> -> vector<36x256xf32>
    %73 = tpu.concatenate %41, %72 in 1 : vector<36x256xf32>, vector<36x256xf32> -> vector<36x512xf32>
    %c0_32 = arith.constant 0 : index
    %c0_33 = arith.constant 0 : index
    %74 = vector.load %arg2[%c0_32, %c0_33] : memref<8x36xf32, #tpu.memory_space<vmem>>, vector<8x36xf32>
    %cst_34 = arith.constant dense<0.000000e+00> : vector<8x512xf32>
    %75 = tpu.matmul %74, %73, %cst_34 {dimension_numbers = #tpu.dot_dimension_numbers<[1], [0], [0], [1], [0, 0, 1, 1], [], []>} : vector<8x36xf32>, vector<36x512xf32>, vector<8x512xf32> -> vector<8x512xf32>
    %c0_35 = arith.constant 0 : index
    %76 = memref.load %arg1[%c0_35] : memref<1xf32, #tpu.memory_space<smem>>
    %cst_36 = arith.constant 0.000000e+00 : f32
    %77 = vector.broadcast %cst_36 : f32 to vector<8x512xf32>
    %78 = arith.cmpf ogt, %75, %77 : vector<8x512xf32>
    %79 = vector.broadcast %76 : f32 to vector<8x512xf32>
    %80 = arith.mulf %79, %75 : vector<8x512xf32>
    %81 = arith.select %78, %75, %80 : vector<8x512xi1>, vector<8x512xf32>
    %82 = vector.extract_strided_slice %81 {offsets = [0, 0], sizes = [8, 256], strides = [1, 1]} : vector<8x512xf32> to vector<8x256xf32>
    %83 = tpu.concatenate %12, %82 in 0 : vector<4x256xf32>, vector<8x256xf32> -> vector<12x256xf32>
    %c0_37 = arith.constant 0 : index
    %c0_38 = arith.constant 0 : index
    %c0_39 = arith.constant 0 : index
    %84 = vector.load %arg4[%c0_37, %c0_38, %c0_39] : memref<2x12x256xf32, #tpu.memory_space<vmem>>, vector<1x12x256xf32>
    %85 = vector.shape_cast %84 : vector<1x12x256xf32> to vector<12x256xf32>
    %86 = vector.shape_cast %83 : vector<12x256xf32> to vector<1x12x256xf32>
    tpu.vector_store %arg4[%c0_37, %c0_38, %c0_39], %86 {strides = array<i32>} : memref<2x12x256xf32, #tpu.memory_space<vmem>>, vector<1x12x256xf32>,
    %87 = vector.extract_strided_slice %81 {offsets = [0, 256], sizes = [8, 256], strides = [1, 1]} : vector<8x512xf32> to vector<8x256xf32>
    %88 = tpu.concatenate %43, %87 in 0 : vector<4x256xf32>, vector<8x256xf32> -> vector<12x256xf32>
    %c1_40 = arith.constant 1 : index
    %c0_41 = arith.constant 0 : index
    %c0_42 = arith.constant 0 : index
    %89 = vector.load %arg4[%c1_40, %c0_41, %c0_42] : memref<2x12x256xf32, #tpu.memory_space<vmem>>, vector<1x12x256xf32>
    %90 = vector.shape_cast %89 : vector<1x12x256xf32> to vector<12x256xf32>
    %91 = vector.shape_cast %88 : vector<12x256xf32> to vector<1x12x256xf32>
    tpu.vector_store %arg4[%c1_40, %c0_41, %c0_42], %91 {strides = array<i32>} : memref<2x12x256xf32, #tpu.memory_space<vmem>>, vector<1x12x256xf32>,
    return
  }
  func.func @transform_0(%arg0: i32) -> i32 {
    %c0_i32 = arith.constant 0 : i32
    %c0_i32_0 = arith.constant 0 : i32
    return %c0_i32 : i32
  }
  func.func @transform_1(%arg0: i32) -> (i32, i32) {
    %c0_i32 = arith.constant 0 : i32
    %c0_i32_0 = arith.constant 0 : i32
    %c0_i32_1 = arith.constant 0 : i32
    return %c0_i32, %c0_i32_0 : i32, i32
  }
  func.func @transform_2(%arg0: i32) -> (i32, i32, i32) {
    %c0_i32 = arith.constant 0 : i32
    %c0_i32_0 = arith.constant 0 : i32
    %c0_i32_1 = arith.constant 0 : i32
    %c0_i32_2 = arith.constant 0 : i32
    return %c0_i32, %c0_i32_0, %c0_i32_1 : i32, i32, i32
  }
  func.func @transform_3(%arg0: i32) -> (i32, i32, i32) {
    %c0_i32 = arith.constant 0 : i32
    %c0_i32_0 = arith.constant 0 : i32
    %c0_i32_1 = arith.constant 0 : i32
    %c0_i32_2 = arith.constant 0 : i32
    return %c0_i32, %c0_i32_0, %c0_i32_1 : i32, i32, i32
  }
}

</mosaic_0001>

<bundles_post_ra>
// kernel: tpu_custom_call.1
= control target key start
LH: loop header
LB: loop body
LE: loop exit
PB: predicated region body
PF: predicated region fallthrough
CT: control target
= control target key end

     0   :  { %9 = vsyncpa [#allocation4], 0  ;;  %s866_s0 = inlined_call_operand.<no memory space> [shape: f32[1], index: 0, kind: input, shape index: {}]   ;;  %s867_s1 = inlined_call_operand.hbm [shape: f32[8,36], index: 1, kind: input, shape index: {}]   ;;  %s868_s2 = inlined_call_operand.hbm [shape: f32[2,4,256], index: 2, kind: input, shape index: {}]   ;;  %s869_s3 = inlined_call_operand.vmem [shape: f32[2,12,256], index: 3, kind: output, shape index: {}]  }
   0x1   :  { %10 = vsyncpa [#allocation6], 0  ;;  %s545_s12 = smov [#allocation3]   ;;  %s546_s14 = smov [#allocation5]  }
   0x2   :  { %s19_s13 = sshll.u32 %s545_s12, 4  ;;  %s28_s15 = sshll.u32 %s546_s14, 4  ;;  %s20_s13 = int_to_ptr.vmem [resolvable:$true] %s19_s13  ;;  %s29_s15 = int_to_ptr.vmem [resolvable:$true] %s28_s15 }
   0x3   :  { %s509_s16 = scalar_lea.vmem %s20_s13, 128  ;;  %p514_p1 = scmp.lt.s32.totalorder %s20_s13, %s20_s13 }
   0x4   :  { %p510_p0 = scmp.ne.s32.totalorder %s20_s13, %s509_s16  ;;  %p515_p2 = scmp.lt.s32.totalorder %s509_s16, %s509_s16 }
   0x6   :  { %p516_p3 = por %p515_p2, %p514_p1 }
   0x8   :  { %p517_p4 = pnand %p516_p3, %p510_p0 }
   0xa   :  { %520 = shalt.err (!%p517_p4)
}
   0xb   :  { %22 = dma.hbm_to_vmem [thread:$0]  %s867_s1, 128, %s20_s13, [#allocation4]  }
   0xc   :  { %s529_s19 = scalar_lea.vmem %s29_s15, 256  ;;  %p534_p6 = scmp.lt.s32.totalorder %s29_s15, %s29_s15 }
   0xd   :  { %p530_p5 = scmp.ne.s32.totalorder %s29_s15, %s529_s19  ;;  %p535_p7 = scmp.lt.s32.totalorder %s529_s19, %s529_s19 }
   0xf   :  { %p536_p8 = por %p535_p7, %p534_p6 }
  0x11   :  { %p537_p9 = pnand %p536_p8, %p530_p5 }
  0x13   :  { %540 = shalt.err (!%p537_p9)
}
  0x14   :  { %s547_s20 = smov 128   ;;  %s548_s21 = smov 8  }
  0x15   :  { %34 = dma.hbm_to_vmem [thread:$0]  %s868_s2, 256, %s29_s15, [#allocation6], %s547_s20, %s547_s20, %s548_s21  }
  0x16   :  { %541 = dma.done.wait [#allocation4], 128  }
  0x17   :  { %542 = vsyncadd [#allocation4], 4294967168 }
  0x18   :  { %543 = dma.done.wait [#allocation6], 256  }
  0x19   :  { %544 = vsyncadd [#allocation6], 4294967040  ;;  %v584_v0 = vld [vmem:[#allocation5 + $0x8] sm:$0xff]  ;;  %v586_v1 = vld [vmem:[#allocation5] sm:$0xff]  ;;  %s549_s1 = smov 112   ;;  %s550_s2 = smov 111   ;;  %v41_v5 = vlaneseq }
  0x1a   :  { %224 = vrot.lane.b32.xlu1 %v584_v0, %s549_s1  ;;  %118 = vrot.lane.b32.xlu0 %v586_v1, %s549_s1  ;;  %v592_v2 = vcombine.high %v584_v0, %v584_v0  ;;  %v598_v3 = vcombine.high %v586_v1, %v586_v1  ;;  %s551_s24 = smov 127   ;;  %s552_s25 = smov 113   ;;  %v555_v4 = vmov 0.0   ;;  %vm162_vm5 = vcmask 1043456  }
  0x1b   :  { %s553_s26 = smov 1   ;;  %s554_s27 = smov 15   ;;  %353 = vmatprep.mubr.f32.mxu0 %v555_v4  ;;  %424 = vmatprep.mubr.f32.mxu1 %v555_v4  ;;  %v628_v6 = vand.u32 127, %v41_v5 }
  0x1c   :  { %s556_s28 = smov 16   ;;  %s557_s29 = smov 17  }
  0x1d   :  { %v631_v7 = vadd.s32 128, %v628_v6  ;;  %v44_v11 = vand.u32 15, %v628_v6  ;;  %vm131_vm2 = vcmp.lt.s32.totalorder %v628_v6, 111  ;;  %vm122_vm6 = vcmp.lt.s32.totalorder %v628_v6, 112 }
  0x1e   :  { %226 = vrot.lane.b32.xlu1 %v592_v2, %s549_s1  ;;  %127 = vrot.lane.b32.xlu0 %v586_v1, %s550_s2  ;;  %vm102_vm7 = vcmp.lt.s32.totalorder %v628_v6, 127  ;;  %vm111_vm9 = vcmp.lt.s32.totalorder %v628_v6, 113  ;;  %vm93_vm12 = vcmp.lt.s32.totalorder %v628_v6, 1  ;;  %vm46_vm13 = vcmp.ge.s32.totalorder %v628_v6, 16 }
  0x1f   :  { %v45_v10 = vand.u32 15, %v631_v7  ;;  %vm49_vm1 = vcmp.lt.s32.totalorder %v631_v7, 240  ;;  %vm649_vm4 = vcmp.lt.s32.totalorder %v44_v11, 15  ;;  %vm686_vm10 = vcmp.ge.s32.totalorder %v44_v11, 1 }
  0x20   :  { %vm82_vm14 = vcmp.lt.s32.totalorder %v628_v6, 15  ;;  %vm759_vm15 = vmand %vm46_vm13, %vm649_vm4 }
  0x21   :  { %vm635_vm0 = vcmp.lt.s32.totalorder %v45_v10, 15  ;;  %vm669_vm8 = vcmp.ge.s32.totalorder %v45_v10, 1 }
  0x22   :  { %129 = vrot.lane.b32.xlu1 %v598_v3, %s550_s2  ;;  %120 = vrot.lane.b32.xlu0 %v598_v3, %s549_s1  ;;  %vm645_vm3 = vmand %vm49_vm1, %vm635_vm0 }
  0x23   :  { %vm694_vm11 = vmand %vm49_vm1, %vm669_vm8 }
  0x26   :  { %234 = vrot.lane.b32.xlu1 %v592_v2, %s550_s2  ;;  %232 = vrot.lane.b32.xlu0 %v584_v0, %s550_s2 }
  0x2a   :  { %100 = vrot.lane.b32.xlu1 %v598_v3, %s551_s24  ;;  %98 = vrot.lane.b32.xlu0 %v586_v1, %s551_s24 }
  0x2e   :  { %109 = vrot.lane.b32.xlu1 %v598_v3, %s552_s25  ;;  %107 = vrot.lane.b32.xlu0 %v586_v1, %s552_s25 }
  0x32   :  { %210 = vrot.lane.b32.xlu1 %v592_v2, %s551_s24  ;;  %208 = vrot.lane.b32.xlu0 %v584_v0, %s551_s24 }
  0x36   :  { %218 = vrot.lane.b32.xlu1 %v592_v2, %s552_s25  ;;  %216 = vrot.lane.b32.xlu0 %v584_v0, %s552_s25 }
  0x3a   :  { %91 = vrot.lane.b32.xlu1 %v598_v3, %s553_s26  ;;  %89 = vrot.lane.b32.xlu0 %v586_v1, %s553_s26 }
  0x3e   :  { %202 = vrot.lane.b32.xlu1 %v592_v2, %s553_s26  ;;  %200 = vrot.lane.b32.xlu0 %v584_v0, %s553_s26 }
  0x42   :  { %80 = vrot.lane.b32.xlu1 %v598_v3, %s554_s27  ;;  %78 = vrot.lane.b32.xlu0 %v586_v1, %s554_s27 }
  0x46   :  { %194 = vrot.lane.b32.xlu1 %v592_v2, %s554_s27  ;;  %192 = vrot.lane.b32.xlu0 %v584_v0, %s554_s27 }
  0x4a   :  { %71 = vrot.lane.b32.xlu1 %v598_v3, %s556_s28  ;;  %69 = vrot.lane.b32.xlu0 %v586_v1, %s556_s28 }
  0x4e   :  { %186 = vrot.lane.b32.xlu1 %v592_v2, %s556_s28  ;;  %184 = vrot.lane.b32.xlu0 %v584_v0, %s556_s28 }
  0x52   :  { %60 = vrot.lane.b32.xlu1 %v598_v3, %s557_s29  ;;  %58 = vrot.lane.b32.xlu0 %v586_v1, %s557_s29 }
  0x56   :  { %178 = vrot.lane.b32.xlu1 %v592_v2, %s557_s29  ;;  %176 = vrot.lane.b32.xlu0 %v584_v0, %s557_s29 }
  0x8c   :  { %v225_v8 = vpop.permute.xlu1 %224  ;;  %v119_v9 = vpop.permute.xlu0 %118 }
  0x90   :  { %v227_v12 = vpop.permute.xlu1 %226  ;;  %v128_v13 = vpop.permute.xlu0 %127 }
  0x91   :  { %v229_v51 = vsel %vm122_vm6, %v227_v12, %v225_v8  ;;  %v228_v56 = vsel %vm122_vm6, %v225_v8, %v227_v12 }
  0x92   :  { %v231_v60 = vsel %vm49_vm1, %v229_v51, 0.0  ;;  %v260_v4 = vrot.slane %v228_v56, 4 }
  0x94   :  { %v130_v17 = vpop.permute.xlu1 %129  ;;  %v121_v18 = vpop.permute.xlu0 %120 }
  0x95   :  { %v132_v19 = vsel %vm131_vm2, %v128_v13, %v130_v17  ;;  %v133_v20 = vsel %vm131_vm2, %v130_v17, %v128_v13  ;;  %v124_v29 = vsel %vm122_vm6, %v121_v18, %v119_v9  ;;  %v123_v33 = vsel %vm122_vm6, %v119_v9, %v121_v18 }
  0x96   :  { %v137_v21 = vsel %vm645_vm3, %v133_v20, 0.0  ;;  %v136_v22 = vsel %vm649_vm4, %v132_v19, 0.0  ;;  %v126_v36 = vsel %vm49_vm1, %v124_v29, 0.0  ;;  %v158_v41 = vrot.slane %v123_v33, 4 }
  0x97   :  { %476 = vmatprep.subr.msk.mxu0 %vm162_vm5, %v137_v21  ;;  %v159_v44 = vrot.slane %v126_v36, 4  ;;  %v261_v9 = vrot.slane %v231_v60, 4  ;;  %vm73_vm1 = vcmp.lt.s32.totalorder %v628_v6, 16 }
  0x98   :  { %477 = vmatpush1.msk.msra.mxu0 %vm162_vm5, %v136_v22  ;;  %v235_v23 = vpop.permute.xlu1 %234  ;;  %v233_v24 = vpop.permute.xlu0 %232 }
  0x99   :  { %v236_v25 = vsel %vm131_vm2, %v233_v24, %v235_v23  ;;  %v237_v26 = vsel %vm131_vm2, %v235_v23, %v233_v24  ;;  %vm801_vm2 = vmand %vm46_vm13, %vm686_vm10 }
  0x9a   :  { %v239_v27 = vsel %vm645_vm3, %v237_v26, 0.0  ;;  %v238_v28 = vsel %vm649_vm4, %v236_v25, 0.0  ;;  %vm273_vm3 = vcmask 293888  }
  0x9b   :  { %479 = vmatprep.subr.msk.mxu1 %vm162_vm5, %v239_v27 }
  0x9c   :  { %v101_v30 = vpop.permute.xlu1 %100  ;;  %480 = vmatpush1.msk.msra.mxu1 %vm162_vm5, %v238_v28  ;;  %v99_v31 = vpop.permute.xlu0 %98 }
  0x9d   :  { %v103_v34 = vsel %vm102_vm7, %v99_v31, %v101_v30  ;;  %v104_v35 = vsel %vm102_vm7, %v101_v30, %v99_v31 }
  0x9e   :  { %v106_v37 = vsel %vm635_vm0, %v104_v35, 0.0  ;;  %v105_v38 = vsel %vm649_vm4, %v103_v34, 0.0 }
  0x9f   :  { %v153_v45 = vrot.slane %v106_v37, 4  ;;  %v152_v48 = vrot.slane %v105_v38, 4 }
  0xa0   :  { %v110_v42 = vpop.permute.xlu1 %109  ;;  %v108_v43 = vpop.permute.xlu0 %107 }
  0xa1   :  { %v112_v46 = vsel %vm111_vm9, %v108_v43, %v110_v42  ;;  %v113_v47 = vsel %vm111_vm9, %v110_v42, %v108_v43  ;;  %v168_v59 = vsel %vm162_vm5, %v598_v3, %v153_v45  ;;  %v167_v62 = vsel %vm162_vm5, %v586_v1, %v152_v48 }
  0xa2   :  { %v116_v49 = vsel %vm686_vm10, %v112_v46, 0.0  ;;  %v117_v50 = vsel %vm694_vm11, %v113_v47, 0.0 }
  0xa3   :  { %v170_v52 = vsel %vm162_vm5, %v117_v50, %v159_v44  ;;  %v169_v53 = vsel %vm162_vm5, %v116_v49, %v158_v41 }
  0xa4   :  { %v211_v54 = vpop.permute.xlu1 %210  ;;  %313 = vmatprep.subr.mxu0 %v170_v52  ;;  %v209_v55 = vpop.permute.xlu0 %208 }
  0xa5   :  { %v212_v57 = vsel %vm102_vm7, %v209_v55, %v211_v54  ;;  %v213_v58 = vsel %vm102_vm7, %v211_v54, %v209_v55  ;;  %314 = vmatpush1.msra.mxu0 %v169_v53 }
  0xa6   :  { %v215_v61 = vsel %vm635_vm0, %v213_v58, 0.0  ;;  %315 = vmatprep.subr.mxu0 %v168_v59  ;;  %v214_v63 = vsel %vm649_vm4, %v212_v57, 0.0 }
  0xa7   :  { %316 = vmatpush1.msra.mxu0 %v167_v62  ;;  %v255_v10 = vrot.slane %v215_v61, 4  ;;  %v254_v12 = vrot.slane %v214_v63, 4 }
  0xa8   :  { %v219_v5 = vpop.permute.xlu1 %218  ;;  %v217_v8 = vpop.permute.xlu0 %216 }
  0xa9   :  { %v220_v7 = vsel %vm111_vm9, %v217_v8, %v219_v5  ;;  %v221_v11 = vsel %vm111_vm9, %v219_v5, %v217_v8  ;;  %v269_v21 = vsel %vm162_vm5, %v592_v2, %v255_v10  ;;  %v268_v22 = vsel %vm162_vm5, %v584_v0, %v254_v12 }
  0xaa   :  { %v222_v13 = vsel %vm686_vm10, %v220_v7, 0.0  ;;  %v223_v15 = vsel %vm694_vm11, %v221_v11, 0.0 }
  0xab   :  { %v271_v17 = vsel %vm162_vm5, %v223_v15, %v261_v9  ;;  %v270_v18 = vsel %vm162_vm5, %v222_v13, %v260_v4 }
  0xac   :  { %v92_v19 = vpop.permute.xlu1 %91  ;;  %384 = vmatprep.subr.mxu1 %v271_v17  ;;  %v90_v20 = vpop.permute.xlu0 %89  ;;  %v272_v17 = vld [vmem:[#allocation3] sm:$0xff] }
  0xad   :  { %385 = vmatpush1.msra.mxu1 %v270_v18  ;;  %v94_v23 = vsel %vm93_vm12, %v90_v20, %v92_v19  ;;  %v95_v24 = vsel %vm93_vm12, %v92_v19, %v90_v20 }
  0xae   :  { %386 = vmatprep.subr.mxu1 %v269_v21  ;;  %v96_v27 = vsel %vm686_vm10, %v95_v24, 0.0  ;;  %v97_v28 = vsel %vm669_vm8, %v94_v23, 0.0 }
  0xaf   :  { %387 = vmatpush1.msra.mxu1 %v268_v22  ;;  %v146_v35 = vrot.slane %v96_v27, 4  ;;  %v147_v36 = vrot.slane %v97_v28, 4 }
  0xb0   :  { %v203_v25 = vpop.permute.xlu1 %202  ;;  %v201_v26 = vpop.permute.xlu0 %200 }
  0xb1   :  { %v204_v29 = vsel %vm93_vm12, %v201_v26, %v203_v25  ;;  %v205_v30 = vsel %vm93_vm12, %v203_v25, %v201_v26 }
  0xb2   :  { %v206_v40 = vsel %vm686_vm10, %v205_v30, 0.0  ;;  %v207_v16 = vsel %vm669_vm8, %v204_v29, 0.0 }
  0xb3   :  { %v248_v47 = vrot.slane %v206_v40, 4  ;;  %v249_v48 = vrot.slane %v207_v16, 4 }
  0xb4   :  { %v81_v33 = vpop.permute.xlu1 %80  ;;  %v79_v34 = vpop.permute.xlu0 %78 }
  0xb5   :  { %v83_v37 = vsel %vm82_vm14, %v79_v34, %v81_v33  ;;  %v84_v38 = vsel %vm82_vm14, %v81_v33, %v79_v34 }
  0xb6   :  { %v87_v41 = vsel %vm759_vm15, %v84_v38, 0.0  ;;  %v88_v42 = vsel %vm635_vm0, %v83_v37, 0.0 }
  0xb7   :  { %v166_v43 = vsel %vm162_vm5, %v88_v42, %v147_v36  ;;  %v165_v44 = vsel %vm162_vm5, %v87_v41, %v146_v35 }
  0xb8   :  { %v195_v45 = vpop.permute.xlu1 %194  ;;  %317 = vmatprep.subr.mxu0 %v166_v43  ;;  %v193_v46 = vpop.permute.xlu0 %192 }
  0xb9   :  { %v196_v49 = vsel %vm82_vm14, %v193_v46, %v195_v45  ;;  %v197_v50 = vsel %vm82_vm14, %v195_v45, %v193_v46  ;;  %318 = vmatpush1.msra.mxu0 %v165_v44 }
  0xba   :  { %v198_v51 = vsel %vm759_vm15, %v197_v50, 0.0  ;;  %v199_v52 = vsel %vm635_vm0, %v196_v49, 0.0  ;;  %vm62_vm0 = vcmp.lt.s32.totalorder %v628_v6, 17  ;;  %v436_v6 = vstv %s866_s0 }
  0xbb   :  { %v267_v53 = vsel %vm162_vm5, %v199_v52, %v249_v48  ;;  %v266_v54 = vsel %vm162_vm5, %v198_v51, %v248_v47 }
  0xbc   :  { %v72_v55 = vpop.permute.xlu1 %71  ;;  %388 = vmatprep.subr.mxu1 %v267_v53  ;;  %v70_v56 = vpop.permute.xlu0 %69 }
  0xbd   :  { %389 = vmatpush1.msra.mxu1 %v266_v54  ;;  %v75_v57 = vsel %vm73_vm1, %v72_v55, %v70_v56  ;;  %v74_v60 = vsel %vm73_vm1, %v70_v56, %v72_v55 }
  0xbe   :  { %v76_v14 = vsel %vm46_vm13, %v75_v57, 0.0  ;;  %v141_v8 = vrot.slane %v74_v60, 4 }
  0xbf   :  { %v140_v5 = vrot.slane %v76_v14, 4 }
  0xc0   :  { %v187_v58 = vpop.permute.xlu1 %186  ;;  %v185_v59 = vpop.permute.xlu0 %184 }
  0xc1   :  { %v189_v61 = vsel %vm73_vm1, %v187_v58, %v185_v59  ;;  %v188_v7 = vsel %vm73_vm1, %v185_v59, %v187_v58 }
  0xc2   :  { %v190_v39 = vsel %vm46_vm13, %v189_v61, 0.0  ;;  %v243_v21 = vrot.slane %v188_v7, 4 }
  0xc3   :  { %v242_v20 = vrot.slane %v190_v39, 4 }
  0xc4   :  { %v61_v63 = vpop.permute.xlu1 %60  ;;  %v59_v4 = vpop.permute.xlu0 %58 }
  0xc5   :  { %v63_v9 = vsel %vm62_vm0, %v59_v4, %v61_v63  ;;  %v64_v10 = vsel %vm62_vm0, %v61_v63, %v59_v4 }
  0xc6   :  { %v67_v11 = vsel %vm801_vm2, %v64_v10, 0.0  ;;  %v68_v12 = vsel %vm669_vm8, %v63_v9, 0.0 }
  0xc7   :  { %v164_v13 = vsel %vm162_vm5, %v68_v12, %v141_v8  ;;  %v163_v15 = vsel %vm162_vm5, %v67_v11, %v140_v5 }
  0xc8   :  { %v179_v18 = vpop.permute.xlu1 %178  ;;  %319 = vmatprep.subr.mxu0 %v164_v13  ;;  %v177_v19 = vpop.permute.xlu0 %176 }
  0xc9   :  { %v180_v22 = vsel %vm62_vm0, %v177_v19, %v179_v18  ;;  %v181_v23 = vsel %vm62_vm0, %v179_v18, %v177_v19  ;;  %320 = vmatpush1.msra.mxu0 %v163_v15 }
  0xca   :  { %v182_v24 = vsel %vm801_vm2, %v181_v23, 0.0  ;;  %v183_v25 = vsel %vm669_vm8, %v180_v22, 0.0  ;;  %478 = vmatmul.mubr.msk.f32.vlgmr.msra.gmra.mxu0 %vm273_vm3, %v272_v17 }
  0xcb   :  { %v265_v26 = vsel %vm162_vm5, %v183_v25, %v243_v21  ;;  %v264_v27 = vsel %vm162_vm5, %v182_v24, %v242_v20 }
  0xcc   :  { %390 = vmatprep.subr.mxu1 %v265_v26 }
  0xcd   :  { %391 = vmatpush1.msra.mxu1 %v264_v27 }
  0xce   :  { %481 = vmatmul.mubr.msk.f32.vlgmr.msra.gmra.mxu1 %vm273_vm3, %v272_v17 }
 0x18a   :  { %v355_v28 = vpop.f32.mrf.mxu0 }
 0x18b   :  { %vm432_vm4 = vcmp.gt.f32.partialorder %v355_v28, 0.0  ;;  %v437_v29 = vmul.f32 %v436_v6, %v355_v28 }
 0x18c   :  { %v357_v30 = vpop.f32.mrf.mxu0 }
 0x18d   :  { %v441_v32 = vsel %vm432_vm4, %v355_v28, %v437_v29  ;;  %vm433_vm6 = vcmp.gt.f32.partialorder %v357_v30, 0.0  ;;  %v438_v31 = vmul.f32 %v436_v6, %v357_v30 }
 0x18e   :  { %v447_v33 = vrot.slane %v441_v32, 4  ;;  %v426_v34 = vpop.f32.mrf.mxu1 }
 0x18f   :  { %v442_v35 = vsel %vm433_vm6, %v357_v30, %v438_v31  ;;  %vm434_vm7 = vcmp.gt.f32.partialorder %v426_v34, 0.0  ;;  %v439_v36 = vmul.f32 %v436_v6, %v426_v34 }
 0x190   :  { %v451_v37 = vsel %vm162_vm5, %v586_v1, %v447_v33  ;;  %455 = vst [vmem:[%s869_s3 + $0x10] sm:$0xf] %v447_v33  ;;  %v448_v38 = vrot.slane %v442_v35, 4  ;;  %v428_v40 = vpop.f32.mrf.mxu1 }
 0x191   :  { %453 = vst [vmem:[%s869_s3] sm:$0xff] %v451_v37  ;;  %v443_v16 = vsel %vm434_vm7, %v426_v34, %v439_v36  ;;  %vm435_vm8 = vcmp.gt.f32.partialorder %v428_v40, 0.0  ;;  %v440_v41 = vmul.f32 %v436_v6, %v428_v40 }
 0x192   :  { %v452_v42 = vsel %vm162_vm5, %v598_v3, %v448_v38  ;;  %456 = vst [vmem:[%s869_s3 + $0x18] sm:$0xf] %v448_v38  ;;  %v459_v1 = vrot.slane %v443_v16, 4 }
 0x193   :  { %454 = vst [vmem:[%s869_s3 + $0x8] sm:$0xff] %v452_v42  ;;  %v444_v43 = vsel %vm435_vm8, %v428_v40, %v440_v41 }
 0x194   :  { %v463_v44 = vsel %vm162_vm5, %v584_v0, %v459_v1  ;;  %484 = vst [vmem:[%s869_s3 + $0x30] sm:$0xf] %v459_v1  ;;  %v460_v45 = vrot.slane %v444_v43, 4 }
 0x195   :  { %482 = vst [vmem:[%s869_s3 + $0x20] sm:$0xff] %v463_v44 }
 0x196   :  { %v464_v3 = vsel %vm162_vm5, %v592_v2, %v460_v45  ;;  %485 = vst [vmem:[%s869_s3 + $0x38] sm:$0xf] %v460_v45 }
 0x197   :  { %483 = vst [vmem:[%s869_s3 + $0x28] sm:$0xff] %v464_v3 }
 0x198   :  { %474 = vsyncpa [#allocation4], 1 }
 0x199   :  { %475 = vsyncpa [#allocation6], 1 }

</bundles_post_ra>
